<compile_context>
chip_gen: v5e
topology: v5e:2x2
jax: 0.10.0
libtpu: 0.0.40
codegen_flags: <defaults>
</compile_context>

<pallas_src>
import functools

import numpy as np

import jax
import jax.numpy as jnp
from jax.experimental import pallas as pl
from jax.experimental.pallas import tpu as pltpu

BETA = 0.1          # SoftThresh threshold (module default beta=0.1)
EPS = 1e-12
EPS2 = EPS * EPS
LANE = 128


def _round_up(x, m):
    return ((x + m - 1) // m) * m


def build_cadmm_operator(v, rho, mxu_dtype=jnp.float32):
    """Precompute H = conj(F)/N @ diag(1/(v+rho)) @ F once per (v, rho).

    Returns (H_re, H_im) as (N, N) arrays in `mxu_dtype`.  Hoisted glue: the
    per-call kernel only does one complex matmul with H.
    """
    v64 = np.asarray(v, dtype=np.float64)
    n = v64.shape[0]
    k = np.arange(n, dtype=np.float64)
    ang = -2.0 * np.pi * np.outer(k, k) / float(n)
    f = np.cos(ang) + 1j * np.sin(ang)           # DFT matrix F (fft along dim 0)
    g = np.conj(f) / float(n)                    # inverse DFT matrix
    w = 1.0 / (v64 + np.float64(rho))            # (n,), float64 like torch rho
    h = (g * w[None, :]) @ f                     # conj(F)/N . diag(w) . F
    hre = jnp.asarray(np.real(h), dtype=mxu_dtype)
    him = jnp.asarray(np.imag(h), dtype=mxu_dtype)
    return hre, him


def _cadmm_kernel(hre_ref, him_ref, ur_ref, ui_ref, yfr_ref, yfi_ref,
                  or_ref, oi_ref, *, rho, beta):
    ur = ur_ref[...]
    ui = ui_ref[...]

    # Complex soft-threshold scale = max(1 - beta/|u|, 0) via rsqrt (EUP slot).
    m2 = ur * ur + ui * ui
    inv_mag = jax.lax.rsqrt(jnp.maximum(m2, EPS2))
    scale = jnp.maximum(1.0 - beta * inv_mag, 0.0)

    # t = rho*(2*S(u) - u) + yf = (rho*(2*scale - 1))*u + yf   (all f32, VPU)
    c = rho * (2.0 * scale - 1.0)
    tr = ur * c + yfr_ref[...]
    ti = ui * c + yfi_ref[...]

    # y = H @ t (complex).  Lane-concat [tr | ti] so each MXU weight push
    # streams 2*TM lanes; accumulate in f32.
    mxu_dtype = hre_ref.dtype
    tm = tr.shape[-1]
    tc = jnp.concatenate([tr, ti], axis=-1).astype(mxu_dtype)      # (N, 2*TM)
    p = jnp.dot(hre_ref[...], tc, preferred_element_type=jnp.float32)
    q = jnp.dot(him_ref[...], tc, preferred_element_type=jnp.float32)
    yr = p[:, :tm] - q[:, tm:]      # Hre@tr - Him@ti
    yi = p[:, tm:] + q[:, :tm]      # Hre@ti + Him@tr

    # u_out = y + u - S(u) = y + (1 - scale)*u
    d = 1.0 - scale
    or_ref[...] = yr + ur * d
    oi_ref[...] = yi + ui * d


def _choose_tile_m(n, m_padded, mxu_bytes, vmem_budget_bytes):
    """Pick a lane-dense column tile that fits the VMEM budget with H resident."""
    h_bytes = 2 * 2 * n * n * mxu_bytes                     # Hre/Him, worst-case 2 bufs
    # Per 128-lane column slab: (4 in + 2 out) double-buffered f32 planes plus
    # ~8 plane-equivalents of in-kernel temporaries (t, concat, P, Q).
    per_slab = (2 * 6 + 8) * n * 4 * LANE
    avail = max(vmem_budget_bytes - h_bytes, per_slab)
    tm = (avail // per_slab) * LANE
    tm = max(LANE, min(int(tm), 1024, m_padded))
    return tm


def unit_cell_cadmm(u_in, yf, hre, him, rho, beta=BETA,
                    vmem_budget_bytes=32 << 20):
    """u_in, yf: complex64 (N, M); hre/him: (N, N) from build_cadmm_operator."""
    n, m = u_in.shape
    assert hre.shape == (n, n) and him.shape == (n, n)

    mxu_bytes = jnp.dtype(hre.dtype).itemsize

    # Lane-dense column axis: pad M up to a multiple of 128, then to the tile.
    m_pad = _round_up(max(m, LANE), LANE)
    tm = _choose_tile_m(n, m_pad, mxu_bytes, vmem_budget_bytes)
    m_pad = _round_up(m_pad, tm)
    num_tiles = m_pad // tm

    ur = jnp.real(u_in).astype(jnp.float32)
    ui = jnp.imag(u_in).astype(jnp.float32)
    yfr = jnp.real(yf).astype(jnp.float32)
    yfi = jnp.imag(yf).astype(jnp.float32)
    if m_pad != m:
        pad = ((0, 0), (0, m_pad - m))
        ur = jnp.pad(ur, pad)
        ui = jnp.pad(ui, pad)
        yfr = jnp.pad(yfr, pad)
        yfi = jnp.pad(yfi, pad)

    h_spec = pl.BlockSpec((n, n), lambda j: (0, 0))          # VMEM-resident H
    col_spec = pl.BlockSpec((n, tm), lambda j: (0, j))       # streamed column slabs

    vmem_need = 2 * (2 * 2 * n * n * mxu_bytes + 14 * n * tm * 4)
    vmem_limit = int(min(max(vmem_need, 32 << 20), 48 << 20))  # safe on v7x 64 MiB

    kernel = functools.partial(_cadmm_kernel, rho=float(rho), beta=float(beta))

    out_r, out_i = pl.pallas_call(
        kernel,
        out_shape=(jax.ShapeDtypeStruct((n, m_pad), jnp.float32),
                   jax.ShapeDtypeStruct((n, m_pad), jnp.float32)),
        grid_spec=pltpu.PrefetchScalarGridSpec(
            num_scalar_prefetch=0,
            grid=(num_tiles,),
            in_specs=[h_spec, h_spec,
                      col_spec, col_spec, col_spec, col_spec],
            out_specs=(col_spec, col_spec)),
        compiler_params=pltpu.CompilerParams(
            dimension_semantics=("parallel",),
            vmem_limit_bytes=vmem_limit),
    )(hre, him, ur, ui, yfr, yfi)

    return (out_r[:, :m] + 1j * out_i[:, :m]).astype(jnp.complex64)


def _reference(u_in, yf, v, rho, beta=BETA):
    """Pure-JAX reference mirroring the PyTorch forward."""
    mag = jnp.abs(u_in)
    scale = jnp.maximum(mag - beta, 0.0) / jnp.maximum(mag, EPS)
    s = u_in * scale
    w = (1.0 / (v + rho)).reshape(-1, 1).astype(jnp.complex64)
    t = rho * (2.0 * s - u_in) + yf
    u_out = jnp.fft.ifft(w * jnp.fft.fft(t, axis=0), axis=0)
    return u_out + u_in - s


if __name__ == "__main__":
    N, M = 8, 32   # N = FFT axis (matches len(v)), M = columns
    key = jax.random.PRNGKey(0)
    k1, k2, k3, k4, k5 = jax.random.split(key, 5)

    u_in = (jax.random.normal(k1, (N, M), dtype=jnp.float32)
            + 1j * jax.random.normal(k2, (N, M), dtype=jnp.float32)).astype(jnp.complex64)
    yf = (jax.random.normal(k3, (N, M), dtype=jnp.float32)
          + 1j * jax.random.normal(k4, (N, M), dtype=jnp.float32)).astype(jnp.complex64)
    v = jax.random.uniform(k5, (N,), dtype=jnp.float32, minval=0.5, maxval=1.5)
    rho = 1.0

    ref = _reference(u_in, yf, v, rho)

    # f32 MXU operands: tight tolerance against the FFT-based reference.
    hre32, him32 = build_cadmm_operator(v, rho, mxu_dtype=jnp.float32)
    out32 = jax.block_until_ready(unit_cell_cadmm(u_in, yf, hre32, him32, rho))
    np.testing.assert_allclose(np.asarray(out32), np.asarray(ref),
                               rtol=2e-3, atol=2e-3)

    # bf16 MXU operands (v6e/v5e MXU throughput), f32 elementwise + accumulation.
    hreb, himb = build_cadmm_operator(v, rho, mxu_dtype=jnp.bfloat16)
    outb = jax.block_until_ready(unit_cell_cadmm(u_in, yf, hreb, himb, rho))
    np.testing.assert_allclose(np.asarray(outb), np.asarray(ref),
                               rtol=1e-1, atol=1e-1)

    print("KERNEL_OK")
</pallas_src>

<mosaic_0001>
module attributes {stable_mosaic.version = 11 : i64} {
  func.func @_cadmm_kernel(%arg0: i32, %arg1: memref<8x8xf32, #tpu.memory_space<vmem>>, %arg2: memref<8x8xf32, #tpu.memory_space<vmem>>, %arg3: memref<8x128xf32, #tpu.memory_space<vmem>>, %arg4: memref<8x128xf32, #tpu.memory_space<vmem>>, %arg5: memref<8x128xf32, #tpu.memory_space<vmem>>, %arg6: memref<8x128xf32, #tpu.memory_space<vmem>>, %arg7: memref<8x128xf32, #tpu.memory_space<vmem>>, %arg8: memref<8x128xf32, #tpu.memory_space<vmem>>) attributes {dimension_semantics = [#tpu.dimension_semantics<parallel>], iteration_bounds = array<i64: 1>, scalar_prefetch = 0 : i64, scratch_operands = 0 : i64, tpu.core_type = #tpu.core_type<tc>, window_params = [{pipeline_mode = #tpu.pipeline_mode<synchronous>, transform_indices = @transform_0, window_bounds = array<i64: 8, 8>}, {pipeline_mode = #tpu.pipeline_mode<synchronous>, transform_indices = @transform_1, window_bounds = array<i64: 8, 8>}, {transform_indices = @transform_2, window_bounds = array<i64: 8, 128>}, {transform_indices = @transform_3, window_bounds = array<i64: 8, 128>}, {transform_indices = @transform_4, window_bounds = array<i64: 8, 128>}, {transform_indices = @transform_5, window_bounds = array<i64: 8, 128>}, {transform_indices = @transform_6, window_bounds = array<i64: 8, 128>}, {transform_indices = @transform_7, window_bounds = array<i64: 8, 128>}]} {
    %c0 = arith.constant 0 : index
    %c0_0 = arith.constant 0 : index
    %0 = vector.load %arg3[%c0, %c0_0] : memref<8x128xf32, #tpu.memory_space<vmem>>, vector<8x128xf32>
    %c0_1 = arith.constant 0 : index
    %c0_2 = arith.constant 0 : index
    %1 = vector.load %arg4[%c0_1, %c0_2] : memref<8x128xf32, #tpu.memory_space<vmem>>, vector<8x128xf32>
    %2 = arith.mulf %0, %0 : vector<8x128xf32>
    %3 = arith.mulf %1, %1 : vector<8x128xf32>
    %4 = arith.addf %2, %3 : vector<8x128xf32>
    %cst = arith.constant 1.000000e-24 : f32
    %5 = vector.broadcast %cst : f32 to vector<8x128xf32>
    %6 = arith.maximumf %4, %5 : vector<8x128xf32>
    %7 = math.rsqrt %6 : vector<8x128xf32>
    %cst_3 = arith.constant 1.000000e-01 : f32
    %8 = vector.broadcast %cst_3 : f32 to vector<8x128xf32>
    %9 = arith.mulf %8, %7 : vector<8x128xf32>
    %cst_4 = arith.constant 1.000000e+00 : f32
    %10 = vector.broadcast %cst_4 : f32 to vector<8x128xf32>
    %11 = arith.subf %10, %9 : vector<8x128xf32>
    %cst_5 = arith.constant 0.000000e+00 : f32
    %12 = vector.broadcast %cst_5 : f32 to vector<8x128xf32>
    %13 = arith.maximumf %11, %12 : vector<8x128xf32>
    %cst_6 = arith.constant 2.000000e+00 : f32
    %14 = vector.broadcast %cst_6 : f32 to vector<8x128xf32>
    %15 = arith.mulf %14, %13 : vector<8x128xf32>
    %cst_7 = arith.constant 1.000000e+00 : f32
    %16 = vector.broadcast %cst_7 : f32 to vector<8x128xf32>
    %17 = arith.subf %15, %16 : vector<8x128xf32>
    %cst_8 = arith.constant 1.000000e+00 : f32
    %18 = vector.broadcast %cst_8 : f32 to vector<8x128xf32>
    %19 = arith.mulf %18, %17 : vector<8x128xf32>
    %20 = arith.mulf %0, %19 : vector<8x128xf32>
    %c0_9 = arith.constant 0 : index
    %c0_10 = arith.constant 0 : index
    %21 = vector.load %arg5[%c0_9, %c0_10] : memref<8x128xf32, #tpu.memory_space<vmem>>, vector<8x128xf32>
    %22 = arith.addf %20, %21 : vector<8x128xf32>
    %23 = arith.mulf %1, %19 : vector<8x128xf32>
    %c0_11 = arith.constant 0 : index
    %c0_12 = arith.constant 0 : index
    %24 = vector.load %arg6[%c0_11, %c0_12] : memref<8x128xf32, #tpu.memory_space<vmem>>, vector<8x128xf32>
    %25 = arith.addf %23, %24 : vector<8x128xf32>
    %26 = tpu.concatenate %22, %25 in 1 : vector<8x128xf32>, vector<8x128xf32> -> vector<8x256xf32>
    %c0_13 = arith.constant 0 : index
    %c0_14 = arith.constant 0 : index
    %27 = vector.load %arg1[%c0_13, %c0_14] : memref<8x8xf32, #tpu.memory_space<vmem>>, vector<8x8xf32>
    %cst_15 = arith.constant dense<0.000000e+00> : vector<8x256xf32>
    %28 = tpu.matmul %27, %26, %cst_15 {dimension_numbers = #tpu.dot_dimension_numbers<[1], [0], [0], [1], [0, 0, 1, 1], [], []>} : vector<8x8xf32>, vector<8x256xf32>, vector<8x256xf32> -> vector<8x256xf32>
    %c0_16 = arith.constant 0 : index
    %c0_17 = arith.constant 0 : index
    %29 = vector.load %arg2[%c0_16, %c0_17] : memref<8x8xf32, #tpu.memory_space<vmem>>, vector<8x8xf32>
    %cst_18 = arith.constant dense<0.000000e+00> : vector<8x256xf32>
    %30 = tpu.matmul %29, %26, %cst_18 {dimension_numbers = #tpu.dot_dimension_numbers<[1], [0], [0], [1], [0, 0, 1, 1], [], []>} : vector<8x8xf32>, vector<8x256xf32>, vector<8x256xf32> -> vector<8x256xf32>
    %31 = vector.extract_strided_slice %28 {offsets = [0, 0], sizes = [8, 128], strides = [1, 1]} : vector<8x256xf32> to vector<8x128xf32>
    %32 = vector.extract_strided_slice %30 {offsets = [0, 128], sizes = [8, 128], strides = [1, 1]} : vector<8x256xf32> to vector<8x128xf32>
    %33 = arith.subf %31, %32 : vector<8x128xf32>
    %34 = vector.extract_strided_slice %28 {offsets = [0, 128], sizes = [8, 128], strides = [1, 1]} : vector<8x256xf32> to vector<8x128xf32>
    %35 = vector.extract_strided_slice %30 {offsets = [0, 0], sizes = [8, 128], strides = [1, 1]} : vector<8x256xf32> to vector<8x128xf32>
    %36 = arith.addf %34, %35 : vector<8x128xf32>
    %cst_19 = arith.constant 1.000000e+00 : f32
    %37 = vector.broadcast %cst_19 : f32 to vector<8x128xf32>
    %38 = arith.subf %37, %13 : vector<8x128xf32>
    %39 = arith.mulf %0, %38 : vector<8x128xf32>
    %40 = arith.addf %33, %39 : vector<8x128xf32>
    %c0_20 = arith.constant 0 : index
    %c0_21 = arith.constant 0 : index
    %41 = vector.load %arg7[%c0_20, %c0_21] : memref<8x128xf32, #tpu.memory_space<vmem>>, vector<8x128xf32>
    tpu.vector_store %arg7[%c0_20, %c0_21], %40 {strides = array<i32>} : memref<8x128xf32, #tpu.memory_space<vmem>>, vector<8x128xf32>,
    %42 = arith.mulf %1, %38 : vector<8x128xf32>
    %43 = arith.addf %36, %42 : vector<8x128xf32>
    %c0_22 = arith.constant 0 : index
    %c0_23 = arith.constant 0 : index
    %44 = vector.load %arg8[%c0_22, %c0_23] : memref<8x128xf32, #tpu.memory_space<vmem>>, vector<8x128xf32>
    tpu.vector_store %arg8[%c0_22, %c0_23], %43 {strides = array<i32>} : memref<8x128xf32, #tpu.memory_space<vmem>>, vector<8x128xf32>,
    return
  }
  func.func @transform_0(%arg0: i32) -> (i32, i32) {
    %c0_i32 = arith.constant 0 : i32
    %c0_i32_0 = arith.constant 0 : i32
    %c0_i32_1 = arith.constant 0 : i32
    return %c0_i32, %c0_i32_0 : i32, i32
  }
  func.func @transform_1(%arg0: i32) -> (i32, i32) {
    %c0_i32 = arith.constant 0 : i32
    %c0_i32_0 = arith.constant 0 : i32
    %c0_i32_1 = arith.constant 0 : i32
    return %c0_i32, %c0_i32_0 : i32, i32
  }
  func.func @transform_2(%arg0: i32) -> (i32, i32) {
    %c0_i32 = arith.constant 0 : i32
    %c0_i32_0 = arith.constant 0 : i32
    return %c0_i32, %arg0 : i32, i32
  }
  func.func @transform_3(%arg0: i32) -> (i32, i32) {
    %c0_i32 = arith.constant 0 : i32
    %c0_i32_0 = arith.constant 0 : i32
    return %c0_i32, %arg0 : i32, i32
  }
  func.func @transform_4(%arg0: i32) -> (i32, i32) {
    %c0_i32 = arith.constant 0 : i32
    %c0_i32_0 = arith.constant 0 : i32
    return %c0_i32, %arg0 : i32, i32
  }
  func.func @transform_5(%arg0: i32) -> (i32, i32) {
    %c0_i32 = arith.constant 0 : i32
    %c0_i32_0 = arith.constant 0 : i32
    return %c0_i32, %arg0 : i32, i32
  }
  func.func @transform_6(%arg0: i32) -> (i32, i32) {
    %c0_i32 = arith.constant 0 : i32
    %c0_i32_0 = arith.constant 0 : i32
    return %c0_i32, %arg0 : i32, i32
  }
  func.func @transform_7(%arg0: i32) -> (i32, i32) {
    %c0_i32 = arith.constant 0 : i32
    %c0_i32_0 = arith.constant 0 : i32
    return %c0_i32, %arg0 : i32, i32
  }
}

</mosaic_0001>

<bundles_post_ra>
// kernel: tpu_custom_call.1
= control target key start
LH: loop header
LB: loop body
LE: loop exit
PB: predicated region body
PF: predicated region fallthrough
CT: control target
= control target key end

     0   :  { %13 = vsyncpa [#allocation3], 0  ;;  %s561_s0 = inlined_call_operand.hbm [shape: f32[8,8], index: 0, kind: input, shape index: {}]   ;;  %s562_s1 = inlined_call_operand.hbm [shape: f32[8,8], index: 1, kind: input, shape index: {}]   ;;  %s563_s2 = inlined_call_operand.hbm [shape: f32[8,128], index: 2, kind: input, shape index: {}]   ;;  %s564_s3 = inlined_call_operand.hbm [shape: f32[8,128], index: 3, kind: input, shape index: {}]   ;;  %s565_s4 = inlined_call_operand.hbm [shape: f32[8,128], index: 4, kind: input, shape index: {}]   ;;  %s566_s5 = inlined_call_operand.hbm [shape: f32[8,128], index: 5, kind: input, shape index: {}]   ;;  %s567_s6 = inlined_call_operand.hbm [shape: f32[8,128], index: 6, kind: output, shape index: {0}]   ;;  %s568_s7 = inlined_call_operand.hbm [shape: f32[8,128], index: 7, kind: output, shape index: {1}]  }
   0x1   :  { %14 = vsyncpa [#allocation6], 0 }
   0x2   :  { %15 = vsyncpa [#allocation9], 0 }
   0x3   :  { %16 = vsyncpa [#allocation12], 0 }
   0x4   :  { %17 = vsyncpa [#allocation4], 0  ;;  %s35_s26 = sshll.u32 %s562_s1, 4  ;;  %s36_s26 = int_to_ptr.hbm [resolvable:$true] %s35_s26 }
   0x5   :  { %18 = vsyncpa [#allocation15], 0  ;;  %s489_s27 = smov [#allocation5]   ;;  %s57_s8 = sshll.u32 %s564_s3, 4  ;;  %s58_s8 = int_to_ptr.hbm [resolvable:$true] %s57_s8 }
   0x6   :  { %s37_s28 = sshll.u32 %s489_s27, 4  ;;  %s490_s9 = smov [#allocation8]   ;;  %s38_s28 = int_to_ptr.vmem [resolvable:$true] %s37_s28 }
   0x7   :  { %40 = dma.hbm_to_vmem [thread:$0]  %s36_s26, 128, %s38_s28, [#allocation6]  }
   0x8   :  { %s59_s10 = sshll.u32 %s490_s9, 4  ;;  %s24_s13 = sshll.u32 %s561_s0, 4  ;;  %s60_s10 = int_to_ptr.vmem [resolvable:$true] %s59_s10  ;;  %s25_s13 = int_to_ptr.hbm [resolvable:$true] %s24_s13 }
   0x9   :  { %62 = dma.hbm_to_vmem [thread:$0]  %s58_s8, 128, %s60_s10, [#allocation9]  }
   0xa   :  { %s46_s15 = sshll.u32 %s563_s2, 4  ;;  %s491_s16 = smov [#allocation2]   ;;  %s47_s15 = int_to_ptr.hbm [resolvable:$true] %s46_s15 }
   0xb   :  { %s26_s17 = sshll.u32 %s491_s16, 4  ;;  %s492_s3 = smov [#allocation7]   ;;  %s27_s17 = int_to_ptr.vmem [resolvable:$true] %s26_s17 }
   0xc   :  { %29 = dma.hbm_to_vmem [thread:$0]  %s25_s13, 128, %s27_s17, [#allocation3]  }
   0xd   :  { %s48_s18 = sshll.u32 %s492_s3, 4  ;;  %s68_s21 = sshll.u32 %s565_s4, 4  ;;  %s49_s18 = int_to_ptr.vmem [resolvable:$true] %s48_s18  ;;  %s69_s21 = int_to_ptr.hbm [resolvable:$true] %s68_s21 }
   0xe   :  { %51 = dma.hbm_to_vmem [thread:$0]  %s47_s15, 128, %s49_s18, [#allocation6]  }
   0xf   :  { %s79_s23 = sshll.u32 %s566_s5, 4  ;;  %s493_s24 = smov [#allocation10]   ;;  %s80_s23 = int_to_ptr.hbm [resolvable:$true] %s79_s23 }
  0x10   :  { %s70_s2 = sshll.u32 %s493_s24, 4  ;;  %s494_s25 = smov [#allocation11]   ;;  %s71_s2 = int_to_ptr.vmem [resolvable:$true] %s70_s2 }
  0x11   :  { %73 = dma.hbm_to_vmem [thread:$0]  %s69_s21, 128, %s71_s2, [#allocation9]  }
  0x12   :  { %s81_s26 = sshll.u32 %s494_s25, 4  ;;  %s82_s26 = int_to_ptr.vmem [resolvable:$true] %s81_s26 }
  0x13   :  { %84 = dma.hbm_to_vmem [thread:$0]  %s80_s23, 128, %s82_s26, [#allocation12]  }
  0x14   :  { %477 = dma.done.wait [#allocation3], 128  }
  0x15   :  { %478 = vsyncadd [#allocation3], 4294967168 }
  0x16   :  { %479 = dma.done.wait [#allocation6], 256  }
  0x17   :  { %480 = vsyncadd [#allocation6], 4294967040 }
  0x18   :  { %481 = dma.done.wait [#allocation9], 256  }
  0x19   :  { %482 = vsyncadd [#allocation9], 4294967040 }
  0x1a   :  { %483 = dma.done.wait [#allocation12], 128  }
  0x1b   :  { %484 = vsyncadd [#allocation12], 4294967168  ;;  %v109_v0 = vld [vmem:[#allocation7] sm:$0xff]  ;;  %v110_v1 = vld [vmem:[#allocation8] sm:$0xff]  ;;  %vm137_vm3 = vcmask 64512   ;;  %s495_s4 = smov [#allocation14]  }
  0x1c   :  { %v111_v2 = vmul.f32 %v109_v0, %v109_v0  ;;  %v112_v3 = vmul.f32 %v110_v1, %v110_v1  ;;  %v131_v18 = vld [vmem:[#allocation10] sm:$0xff]  ;;  %v134_v19 = vld [vmem:[#allocation11] sm:$0xff]  ;;  %s250_s5 = sshll.u32 %s495_s4, 4  ;;  %s252_s29 = sshll.u32 %s568_s7, 4  ;;  %s251_s5 = int_to_ptr.vmem [resolvable:$true] %s250_s5  ;;  %s253_s29 = int_to_ptr.hbm [resolvable:$true] %s252_s29 }
  0x1d   :  { %v181_v24 = vld [vmem:[#allocation5] sm:$0xff]  ;;  %v136_v25 = vld [vmem:[#allocation2] sm:$0xff]  ;;  %s496_s30 = smov [#allocation13]   ;;  %s241_s11 = sshll.u32 %s567_s6, 4  ;;  %s242_s11 = int_to_ptr.hbm [resolvable:$true] %s241_s11 }
  0x1e   :  { %v113_v4 = vadd.f32 %v112_v3, %v111_v2  ;;  %s239_s8 = sshll.u32 %s496_s30, 4  ;;  %s240_s8 = int_to_ptr.vmem [resolvable:$true] %s239_s8 }
  0x20   :  { %v114_v5 = vmax.f32 %v113_v4, 1e-24 }
  0x22   :  { %283 = vrsqrt.f32 %v114_v5  ;;  %vm121_vm0 = vweird.f32 %v114_v5 }
  0x28   :  { %v284_v6 = vpop.eup %283 }
  0x29   :  { %v116_v7 = vmul.f32 %v284_v6, %v114_v5  ;;  %vm122_vm1 = vweird.f32 %v284_v6 }
  0x2a   :  { %vm123_vm2 = vmor %vm121_vm0, %vm122_vm1 }
  0x2b   :  { %v117_v8 = vmul.f32 %v284_v6, %v116_v7 }
  0x2d   :  { %v118_v9 = vmul.f32 0.5, %v117_v8 }
  0x2f   :  { %v119_v10 = vsub.f32 1.5, %v118_v9 }
  0x31   :  { %v120_v11 = vmul.f32 %v284_v6, %v119_v10 }
  0x33   :  { %v124_v12 = vsel %vm123_vm2, %v284_v6, %v120_v11 }
  0x34   :  { %v125_v13 = vmul.f32 0.1, %v124_v12 }
  0x36   :  { %v126_v14 = vsub.f32 1.0, %v125_v13 }
  0x38   :  { %v127_v15 = vmax.f32 %v126_v14, 0.0 }
  0x3a   :  { %v128_v16 = vmul.f32 2.0, %v127_v15  ;;  %v227_v26 = vsub.f32 1.0, %v127_v15 }
  0x3c   :  { %v270_v17 = vadd.f32 -1.0, %v128_v16  ;;  %v231_v29 = vmul.f32 %v227_v26, %v110_v1  ;;  %v228_v30 = vmul.f32 %v227_v26, %v109_v0 }
  0x3e   :  { %v130_v20 = vmul.f32 %v270_v17, %v109_v0  ;;  %v133_v21 = vmul.f32 %v270_v17, %v110_v1 }
  0x40   :  { %v132_v22 = vadd.f32 %v131_v18, %v130_v20  ;;  %v135_v23 = vadd.f32 %v134_v19, %v133_v21 }
  0x42   :  { %200 = vmatpush.msra.mxu2 %v132_v22  ;;  %220 = vmatpush.msra.mxu3 %v135_v23 }
  0x43   :  { %273 = vmatmul.msk.f32.vlgmr.msra.gmra.mxu2 %vm137_vm3, %v181_v24  ;;  %274 = vmatmul.msk.f32.vlgmr.msra.gmra.mxu3 %vm137_vm3, %v181_v24 }
  0x44   :  { %156 = vmatpush.msra.mxu0 %v132_v22  ;;  %176 = vmatpush.msra.mxu1 %v135_v23 }
  0x45   :  { %271 = vmatmul.msk.f32.vlgmr.msra.gmra.mxu0 %vm137_vm3, %v136_v25  ;;  %272 = vmatmul.msk.f32.vlgmr.msra.gmra.mxu1 %vm137_vm3, %v136_v25 }
  0xc2   :  { %v158_v27 = vpop.f32.mrf.mxu0  ;;  %v178_v28 = vpop.f32.mrf.mxu1 }
  0xc6   :  { %v202_v31 = vpop.f32.mrf.mxu2  ;;  %v222_v32 = vpop.f32.mrf.mxu3 }
  0xc7   :  { %v226_v33 = vadd.f32 %v202_v31, %v178_v28  ;;  %v225_v34 = vsub.f32 %v158_v27, %v222_v32 }
  0xc9   :  { %v232_v35 = vadd.f32 %v231_v29, %v226_v33  ;;  %v229_v36 = vadd.f32 %v228_v30, %v225_v34 }
  0xcb   :  { %233 = vst [vmem:[#allocation14] sm:$0xff] %v232_v35 }
  0xcc   :  { %230 = vst [vmem:[#allocation13] sm:$0xff] %v229_v36  ;;  %255 = dma.vmem_to_hbm [thread:$0]  %s251_s5, 128, %s253_s29, [#allocation15]  }
  0xcd   :  { %244 = dma.vmem_to_hbm [thread:$0]  %s240_s8, 128, %s242_s11, [#allocation4]  }
  0xce   :  { %485 = dma.done.wait [#allocation4], 128  }
  0xcf   :  { %486 = vsyncadd [#allocation4], 4294967168 }
  0xd0   :  { %487 = dma.done.wait [#allocation15], 128  }
  0xd1   :  { %488 = vsyncadd [#allocation15], 4294967168 }
  0xd2   :  { %264 = vsyncpa [#allocation3], 1 }
  0xd3   :  { %265 = vsyncpa [#allocation6], 1 }
  0xd4   :  { %266 = vsyncpa [#allocation9], 1 }
  0xd5   :  { %267 = vsyncpa [#allocation12], 1 }
  0xd6   :  { %268 = vsyncpa [#allocation4], 1 }
  0xd7   :  { %269 = vsyncpa [#allocation15], 1 }

</bundles_post_ra>
